<compile_context>
chip_gen: v5e
topology: v5e:2x2
jax: 0.10.0
libtpu: 0.0.40
codegen_flags: <defaults>
</compile_context>

<pallas_src>
import jax
import jax.numpy as jnp
from jax.experimental import pallas as pl
from jax.experimental.pallas import tpu as pltpu

# encoder: Linear(52,36) ReLU Linear(36,16) ReLU Linear(16,8)
# decoder: Linear(8,16)  ReLU Linear(16,36) ReLU Linear(36,52) ReLU
LAYER_DIMS = [(52, 36), (36, 16), (16, 8), (8, 16), (16, 36), (36, 52)]
RELU_FLAGS = [True, True, False, True, True, True]
NUM_LAYERS = 6
FDIM = 52          # input / output feature dim
PAD = 64           # padded hidden feature dim (every layer dim <= 64)


def _round_up(x, m):
    return ((x + m - 1) // m) * m


def ae_kernel(x_ref, w0_ref, w_ref, b_ref, o_ref):
    """Runs one (TILE_B, 52) batch tile through the full 6-layer MLP.

    x_ref  : (TILE_B, 52)    activations, batch on sublanes / features on lanes
    w0_ref : (52, 64)        layer-0 weight, W0^T zero-padded in the out dim
    w_ref  : (5, 64, 64)     layers 1..5 weights, W^T zero-padded to 64x64
    b_ref  : (6, 1, 64)      per-layer biases, zero-padded
    o_ref  : (TILE_B, 52)    reconstructed output tile
    """
    # Compute in f32 regardless of I/O dtype (v5e VPU/EUP have no bf16).
    h = x_ref[...].astype(jnp.float32)                        # (TILE_B, 52)

    # Layer 0 directly on the 52-wide input: MXU handles the sub-64 K dim.
    # Zero-padded weight columns + zero-padded biases keep the padded feature
    # lanes exactly zero through every layer (including the no-ReLU layer).
    h = jnp.dot(h, w0_ref[...], preferred_element_type=jnp.float32) + b_ref[0]
    h = jnp.maximum(h, 0.0)                                   # RELU_FLAGS[0]

    for l in range(1, NUM_LAYERS):
        h = jnp.dot(h, w_ref[l - 1],
                    preferred_element_type=jnp.float32) + b_ref[l]
        if RELU_FLAGS[l]:
            h = jnp.maximum(h, 0.0)

    o_ref[...] = h[:, :FDIM].astype(o_ref.dtype)


def make_params(key):
    """Deterministic params mimicking torch.nn.Linear default init.

    Weight stored torch-style as (out_features, in_features); bias as (out,).
    """
    params = []
    for (fan_in, fan_out) in LAYER_DIMS:
        key, kw, kb = jax.random.split(key, 3)
        bound = 1.0 / (fan_in ** 0.5)
        w = jax.random.uniform(kw, (fan_out, fan_in), jnp.float32, -bound, bound)
        b = jax.random.uniform(kb, (fan_out,), jnp.float32, -bound, bound)
        params.append((w, b))
    return params


def pack_params(params):
    """Pack the 6 (w, b) pairs into transposed, zero-padded blocks.

    Returns:
      w0_packed : (52, 64)      W0^T, out-dim padded 36 -> 64
      w_packed  : (5, 64, 64)   W^T for layers 1..5, both dims padded
      b_packed  : (6, 1, 64)    biases, padded
    """
    w0_packed = jnp.zeros((FDIM, PAD), jnp.float32)
    w_packed = jnp.zeros((NUM_LAYERS - 1, PAD, PAD), jnp.float32)
    b_packed = jnp.zeros((NUM_LAYERS, 1, PAD), jnp.float32)

    w0, b0 = params[0]                       # (36, 52), (36,)
    w0_packed = w0_packed.at[:, :w0.shape[0]].set(w0.T)
    b_packed = b_packed.at[0, 0, :b0.shape[0]].set(b0)

    for l in range(1, NUM_LAYERS):
        w, b = params[l]
        fo, fi = w.shape
        w_packed = w_packed.at[l - 1, :fi, :fo].set(w.T)
        b_packed = b_packed.at[l, 0, :fo].set(b)
    return w0_packed, w_packed, b_packed


def ae_forward(x, w0_packed, w_packed, b_packed, *,
               tile_b=4096, io_dtype=jnp.float32):
    """Autoencoder forward: x (B, 52) -> (B, 52) in `io_dtype`.

    io_dtype=jnp.bfloat16 halves HBM I/O traffic; compute stays f32 in-kernel.
    """
    B = x.shape[0]
    assert x.shape[1] == FDIM

    itemsize = jnp.dtype(io_dtype).itemsize
    sub = max(8, 32 // itemsize)             # sublane alignment: 8 f32, 16 bf16

    # Batch tile: big enough to amortize the ~0.35us per-step overhead, small
    # enough for VMEM (a 4096x52 f32 in+out pair, double-buffered, is ~3.4 MiB).
    tile_b = min(tile_b, _round_up(max(B, 1), sub))
    b_pad = _round_up(B, tile_b)

    # If a large batch collapsed to a single grid step, split it in two so the
    # "parallel" axis can shard across both TensorCores on v7x.
    if b_pad == tile_b and B >= 1024:
        tile_b = _round_up(pl.cdiv(B, 2), sub)
        b_pad = _round_up(B, tile_b)

    grid = (b_pad // tile_b,)

    x_io = x.astype(io_dtype)
    if b_pad != B:
        x_io = jnp.pad(x_io, ((0, b_pad - B), (0, 0)))

    flops = 2 * b_pad * sum(i * o for i, o in LAYER_DIMS)
    bytes_accessed = (2 * itemsize * b_pad * FDIM          # read x + write out
                      + 4 * int(w0_packed.size)            # weights/biases are
                      + 4 * int(w_packed.size)             # VMEM-resident, read
                      + 4 * int(b_packed.size))            # from HBM once

    out = pl.pallas_call(
        ae_kernel,
        out_shape=jax.ShapeDtypeStruct((b_pad, FDIM), io_dtype),
        grid=grid,
        in_specs=[
            # batch tile, pipelined along the grid
            pl.BlockSpec((tile_b, FDIM), lambda i: (i, 0)),
            # packed weights / biases: constant index maps -> DMA'd once and
            # kept VMEM-resident across all grid steps
            pl.BlockSpec((FDIM, PAD), lambda i: (0, 0)),
            pl.BlockSpec((NUM_LAYERS - 1, PAD, PAD), lambda i: (0, 0, 0)),
            pl.BlockSpec((NUM_LAYERS, 1, PAD), lambda i: (0, 0, 0)),
        ],
        out_specs=pl.BlockSpec((tile_b, FDIM), lambda i: (i, 0)),
        compiler_params=pltpu.CompilerParams(
            dimension_semantics=("parallel",)),
        cost_estimate=pl.CostEstimate(
            flops=int(flops), transcendentals=0,
            bytes_accessed=int(bytes_accessed)),
    )(x_io, w0_packed, w_packed, b_packed)

    return out if b_pad == B else out[:B]


def ae_forward_ref(x, params):
    """Pure-JAX reference (matches torch: y = x @ W.T + b)."""
    h = x
    for l, (w, b) in enumerate(params):
        h = h @ w.T + b
        if RELU_FLAGS[l]:
            h = jnp.maximum(h, 0.0)
    return h


if __name__ == "__main__":
    key = jax.random.PRNGKey(0)
    k_params, k_x = jax.random.split(key)

    params = make_params(k_params)
    w0_packed, w_packed, b_packed = pack_params(params)

    x = jax.random.normal(k_x, (8, 52), jnp.float32)   # batch=8, features=52

    # f32 path: preserves the torch module's f32 numerics.
    out = jax.block_until_ready(ae_forward(x, w0_packed, w_packed, b_packed))
    ref = ae_forward_ref(x, params)
    assert out.shape == (8, 52)
    assert out.dtype == jnp.float32
    assert jnp.allclose(out, ref, atol=1e-4, rtol=1e-4), "f32 mismatch vs reference"

    # bf16 I/O path: halves HBM traffic; compute stays f32 in-kernel.
    out_bf = jax.block_until_ready(
        ae_forward(x, w0_packed, w_packed, b_packed, io_dtype=jnp.bfloat16))
    ref_bf = ae_forward_ref(x.astype(jnp.bfloat16).astype(jnp.float32), params)
    assert out_bf.shape == (8, 52)
    assert out_bf.dtype == jnp.bfloat16
    assert jnp.allclose(out_bf.astype(jnp.float32), ref_bf,
                        atol=1e-2, rtol=1e-2), "bf16 mismatch vs reference"

    print("KERNEL_OK")
</pallas_src>

<mosaic_0001>
module attributes {stable_mosaic.version = 11 : i64} {
  func.func @ae_kernel(%arg0: i32, %arg1: memref<8x52xf32, #tpu.memory_space<vmem>>, %arg2: memref<52x64xf32, #tpu.memory_space<vmem>>, %arg3: memref<5x64x64xf32, #tpu.memory_space<vmem>>, %arg4: memref<6x1x64xf32, #tpu.memory_space<vmem>>, %arg5: memref<8x52xf32, #tpu.memory_space<vmem>>) attributes {dimension_semantics = [#tpu.dimension_semantics<parallel>], iteration_bounds = array<i64: 1>, scalar_prefetch = 0 : i64, scratch_operands = 0 : i64, tpu.core_type = #tpu.core_type<tc>, window_params = [{transform_indices = @transform_0, window_bounds = array<i64: 8, 52>}, {pipeline_mode = #tpu.pipeline_mode<synchronous>, transform_indices = @transform_1, window_bounds = array<i64: 52, 64>}, {pipeline_mode = #tpu.pipeline_mode<synchronous>, transform_indices = @transform_2, window_bounds = array<i64: 5, 64, 64>}, {pipeline_mode = #tpu.pipeline_mode<synchronous>, transform_indices = @transform_3, window_bounds = array<i64: 6, 1, 64>}, {transform_indices = @transform_4, window_bounds = array<i64: 8, 52>}]} {
    %c0 = arith.constant 0 : index
    %c0_0 = arith.constant 0 : index
    %0 = vector.load %arg1[%c0, %c0_0] : memref<8x52xf32, #tpu.memory_space<vmem>>, vector<8x52xf32>
    %c0_1 = arith.constant 0 : index
    %c0_2 = arith.constant 0 : index
    %1 = vector.load %arg2[%c0_1, %c0_2] : memref<52x64xf32, #tpu.memory_space<vmem>>, vector<52x64xf32>
    %cst = arith.constant dense<0.000000e+00> : vector<8x64xf32>
    %2 = tpu.matmul %0, %1, %cst {dimension_numbers = #tpu.dot_dimension_numbers<[1], [0], [0], [1], [0, 0, 1, 1], [], []>} : vector<8x52xf32>, vector<52x64xf32>, vector<8x64xf32> -> vector<8x64xf32>
    %c0_3 = arith.constant 0 : index
    %c0_4 = arith.constant 0 : index
    %c0_5 = arith.constant 0 : index
    %3 = vector.load %arg4[%c0_3, %c0_4, %c0_5] : memref<6x1x64xf32, #tpu.memory_space<vmem>>, vector<1x1x64xf32>
    %4 = vector.shape_cast %3 : vector<1x1x64xf32> to vector<1x64xf32>
    %5 = vector.broadcast %4 : vector<1x64xf32> to vector<8x64xf32>
    %6 = arith.addf %2, %5 : vector<8x64xf32>
    %cst_6 = arith.constant 0.000000e+00 : f32
    %7 = vector.broadcast %cst_6 : f32 to vector<8x64xf32>
    %8 = arith.maximumf %6, %7 : vector<8x64xf32>
    %c0_7 = arith.constant 0 : index
    %c0_8 = arith.constant 0 : index
    %c0_9 = arith.constant 0 : index
    %9 = vector.load %arg3[%c0_7, %c0_8, %c0_9] : memref<5x64x64xf32, #tpu.memory_space<vmem>>, vector<1x64x64xf32>
    %10 = vector.shape_cast %9 : vector<1x64x64xf32> to vector<64x64xf32>
    %cst_10 = arith.constant dense<0.000000e+00> : vector<8x64xf32>
    %11 = tpu.matmul %8, %10, %cst_10 {dimension_numbers = #tpu.dot_dimension_numbers<[1], [0], [0], [1], [0, 0, 1, 1], [], []>} : vector<8x64xf32>, vector<64x64xf32>, vector<8x64xf32> -> vector<8x64xf32>
    %c1 = arith.constant 1 : index
    %c0_11 = arith.constant 0 : index
    %c0_12 = arith.constant 0 : index
    %12 = vector.load %arg4[%c1, %c0_11, %c0_12] : memref<6x1x64xf32, #tpu.memory_space<vmem>>, vector<1x1x64xf32>
    %13 = vector.shape_cast %12 : vector<1x1x64xf32> to vector<1x64xf32>
    %14 = vector.broadcast %13 : vector<1x64xf32> to vector<8x64xf32>
    %15 = arith.addf %11, %14 : vector<8x64xf32>
    %cst_13 = arith.constant 0.000000e+00 : f32
    %16 = vector.broadcast %cst_13 : f32 to vector<8x64xf32>
    %17 = arith.maximumf %15, %16 : vector<8x64xf32>
    %c1_14 = arith.constant 1 : index
    %c0_15 = arith.constant 0 : index
    %c0_16 = arith.constant 0 : index
    %18 = vector.load %arg3[%c1_14, %c0_15, %c0_16] : memref<5x64x64xf32, #tpu.memory_space<vmem>>, vector<1x64x64xf32>
    %19 = vector.shape_cast %18 : vector<1x64x64xf32> to vector<64x64xf32>
    %cst_17 = arith.constant dense<0.000000e+00> : vector<8x64xf32>
    %20 = tpu.matmul %17, %19, %cst_17 {dimension_numbers = #tpu.dot_dimension_numbers<[1], [0], [0], [1], [0, 0, 1, 1], [], []>} : vector<8x64xf32>, vector<64x64xf32>, vector<8x64xf32> -> vector<8x64xf32>
    %c2 = arith.constant 2 : index
    %c0_18 = arith.constant 0 : index
    %c0_19 = arith.constant 0 : index
    %21 = vector.load %arg4[%c2, %c0_18, %c0_19] : memref<6x1x64xf32, #tpu.memory_space<vmem>>, vector<1x1x64xf32>
    %22 = vector.shape_cast %21 : vector<1x1x64xf32> to vector<1x64xf32>
    %23 = vector.broadcast %22 : vector<1x64xf32> to vector<8x64xf32>
    %24 = arith.addf %20, %23 : vector<8x64xf32>
    %c2_20 = arith.constant 2 : index
    %c0_21 = arith.constant 0 : index
    %c0_22 = arith.constant 0 : index
    %25 = vector.load %arg3[%c2_20, %c0_21, %c0_22] : memref<5x64x64xf32, #tpu.memory_space<vmem>>, vector<1x64x64xf32>
    %26 = vector.shape_cast %25 : vector<1x64x64xf32> to vector<64x64xf32>
    %cst_23 = arith.constant dense<0.000000e+00> : vector<8x64xf32>
    %27 = tpu.matmul %24, %26, %cst_23 {dimension_numbers = #tpu.dot_dimension_numbers<[1], [0], [0], [1], [0, 0, 1, 1], [], []>} : vector<8x64xf32>, vector<64x64xf32>, vector<8x64xf32> -> vector<8x64xf32>
    %c3 = arith.constant 3 : index
    %c0_24 = arith.constant 0 : index
    %c0_25 = arith.constant 0 : index
    %28 = vector.load %arg4[%c3, %c0_24, %c0_25] : memref<6x1x64xf32, #tpu.memory_space<vmem>>, vector<1x1x64xf32>
    %29 = vector.shape_cast %28 : vector<1x1x64xf32> to vector<1x64xf32>
    %30 = vector.broadcast %29 : vector<1x64xf32> to vector<8x64xf32>
    %31 = arith.addf %27, %30 : vector<8x64xf32>
    %cst_26 = arith.constant 0.000000e+00 : f32
    %32 = vector.broadcast %cst_26 : f32 to vector<8x64xf32>
    %33 = arith.maximumf %31, %32 : vector<8x64xf32>
    %c3_27 = arith.constant 3 : index
    %c0_28 = arith.constant 0 : index
    %c0_29 = arith.constant 0 : index
    %34 = vector.load %arg3[%c3_27, %c0_28, %c0_29] : memref<5x64x64xf32, #tpu.memory_space<vmem>>, vector<1x64x64xf32>
    %35 = vector.shape_cast %34 : vector<1x64x64xf32> to vector<64x64xf32>
    %cst_30 = arith.constant dense<0.000000e+00> : vector<8x64xf32>
    %36 = tpu.matmul %33, %35, %cst_30 {dimension_numbers = #tpu.dot_dimension_numbers<[1], [0], [0], [1], [0, 0, 1, 1], [], []>} : vector<8x64xf32>, vector<64x64xf32>, vector<8x64xf32> -> vector<8x64xf32>
    %c4 = arith.constant 4 : index
    %c0_31 = arith.constant 0 : index
    %c0_32 = arith.constant 0 : index
    %37 = vector.load %arg4[%c4, %c0_31, %c0_32] : memref<6x1x64xf32, #tpu.memory_space<vmem>>, vector<1x1x64xf32>
    %38 = vector.shape_cast %37 : vector<1x1x64xf32> to vector<1x64xf32>
    %39 = vector.broadcast %38 : vector<1x64xf32> to vector<8x64xf32>
    %40 = arith.addf %36, %39 : vector<8x64xf32>
    %cst_33 = arith.constant 0.000000e+00 : f32
    %41 = vector.broadcast %cst_33 : f32 to vector<8x64xf32>
    %42 = arith.maximumf %40, %41 : vector<8x64xf32>
    %c4_34 = arith.constant 4 : index
    %c0_35 = arith.constant 0 : index
    %c0_36 = arith.constant 0 : index
    %43 = vector.load %arg3[%c4_34, %c0_35, %c0_36] : memref<5x64x64xf32, #tpu.memory_space<vmem>>, vector<1x64x64xf32>
    %44 = vector.shape_cast %43 : vector<1x64x64xf32> to vector<64x64xf32>
    %cst_37 = arith.constant dense<0.000000e+00> : vector<8x64xf32>
    %45 = tpu.matmul %42, %44, %cst_37 {dimension_numbers = #tpu.dot_dimension_numbers<[1], [0], [0], [1], [0, 0, 1, 1], [], []>} : vector<8x64xf32>, vector<64x64xf32>, vector<8x64xf32> -> vector<8x64xf32>
    %c5 = arith.constant 5 : index
    %c0_38 = arith.constant 0 : index
    %c0_39 = arith.constant 0 : index
    %46 = vector.load %arg4[%c5, %c0_38, %c0_39] : memref<6x1x64xf32, #tpu.memory_space<vmem>>, vector<1x1x64xf32>
    %47 = vector.shape_cast %46 : vector<1x1x64xf32> to vector<1x64xf32>
    %48 = vector.broadcast %47 : vector<1x64xf32> to vector<8x64xf32>
    %49 = arith.addf %45, %48 : vector<8x64xf32>
    %cst_40 = arith.constant 0.000000e+00 : f32
    %50 = vector.broadcast %cst_40 : f32 to vector<8x64xf32>
    %51 = arith.maximumf %49, %50 : vector<8x64xf32>
    %52 = vector.extract_strided_slice %51 {offsets = [0, 0], sizes = [8, 52], strides = [1, 1]} : vector<8x64xf32> to vector<8x52xf32>
    %c0_41 = arith.constant 0 : index
    %c0_42 = arith.constant 0 : index
    %53 = vector.load %arg5[%c0_41, %c0_42] : memref<8x52xf32, #tpu.memory_space<vmem>>, vector<8x52xf32>
    tpu.vector_store %arg5[%c0_41, %c0_42], %52 {strides = array<i32>} : memref<8x52xf32, #tpu.memory_space<vmem>>, vector<8x52xf32>,
    return
  }
  func.func @transform_0(%arg0: i32) -> (i32, i32) {
    %c0_i32 = arith.constant 0 : i32
    %c0_i32_0 = arith.constant 0 : i32
    return %arg0, %c0_i32 : i32, i32
  }
  func.func @transform_1(%arg0: i32) -> (i32, i32) {
    %c0_i32 = arith.constant 0 : i32
    %c0_i32_0 = arith.constant 0 : i32
    %c0_i32_1 = arith.constant 0 : i32
    return %c0_i32, %c0_i32_0 : i32, i32
  }
  func.func @transform_2(%arg0: i32) -> (i32, i32, i32) {
    %c0_i32 = arith.constant 0 : i32
    %c0_i32_0 = arith.constant 0 : i32
    %c0_i32_1 = arith.constant 0 : i32
    %c0_i32_2 = arith.constant 0 : i32
    return %c0_i32, %c0_i32_0, %c0_i32_1 : i32, i32, i32
  }
  func.func @transform_3(%arg0: i32) -> (i32, i32, i32) {
    %c0_i32 = arith.constant 0 : i32
    %c0_i32_0 = arith.constant 0 : i32
    %c0_i32_1 = arith.constant 0 : i32
    %c0_i32_2 = arith.constant 0 : i32
    return %c0_i32, %c0_i32_0, %c0_i32_1 : i32, i32, i32
  }
  func.func @transform_4(%arg0: i32) -> (i32, i32) {
    %c0_i32 = arith.constant 0 : i32
    %c0_i32_0 = arith.constant 0 : i32
    return %arg0, %c0_i32 : i32, i32
  }
}

</mosaic_0001>

<bundles_post_ra>
// kernel: tpu_custom_call.1
= control target key start
LH: loop header
LB: loop body
LE: loop exit
PB: predicated region body
PF: predicated region fallthrough
CT: control target
= control target key end

     0   :  { %9 = vsyncpa [#allocation3], 0  ;;  %s535_s0 = inlined_call_operand.hbm [shape: f32[8,52], index: 0, kind: input, shape index: {}]   ;;  %s536_s1 = inlined_call_operand.hbm [shape: f32[52,64], index: 1, kind: input, shape index: {}]   ;;  %s537_s2 = inlined_call_operand.hbm [shape: f32[5,64,64], index: 2, kind: input, shape index: {}]   ;;  %s538_s3 = inlined_call_operand.hbm [shape: f32[6,1,64], index: 3, kind: input, shape index: {}]   ;;  %s539_s4 = inlined_call_operand.hbm [shape: f32[8,52], index: 4, kind: output, shape index: {}]  }
   0x1   :  { %10 = vsyncpa [#allocation6], 0 }
   0x2   :  { %11 = vsyncpa [#allocation9], 0  ;;  %s28_s17 = sshll.u32 %s536_s1, 4  ;;  %s29_s17 = int_to_ptr.hbm [resolvable:$true] %s28_s17 }
   0x3   :  { %12 = vsyncpa [#allocation4], 0  ;;  %s479_s18 = smov [#allocation5]   ;;  %s18_s22 = sshll.u32 %s535_s0, 4  ;;  %s19_s22 = int_to_ptr.hbm [resolvable:$true] %s18_s22 }
   0x4   :  { %s30_s19 = sshll.u32 %s479_s18, 4  ;;  %s480_s23 = smov 128   ;;  %s31_s19 = int_to_ptr.vmem [resolvable:$true] %s30_s19 }
   0x5   :  { %s481_s24 = smov 8   ;;  %s482_s25 = smov [#allocation2]  }
   0x6   :  { %36 = dma.hbm_to_vmem [thread:$0]  %s29_s17, 896, %s31_s19, [#allocation6], %s480_s23, %s480_s23, %s481_s24  }
   0x7   :  { %s20_s26 = sshll.u32 %s482_s25, 4  ;;  %s41_s29 = sshll.u32 %s537_s2, 4  ;;  %s21_s26 = int_to_ptr.vmem [resolvable:$true] %s20_s26  ;;  %s42_s29 = int_to_ptr.hbm [resolvable:$true] %s41_s29 }
   0x8   :  { %23 = dma.hbm_to_vmem [thread:$0]  %s19_s22, 128, %s21_s26, [#allocation3]  }
   0x9   :  { %s54_s5 = sshll.u32 %s538_s3, 4  ;;  %s483_s6 = smov [#allocation7]   ;;  %s55_s5 = int_to_ptr.hbm [resolvable:$true] %s54_s5 }
   0xa   :  { %s43_s7 = sshll.u32 %s483_s6, 4  ;;  %s484_s0 = smov [#allocation8]   ;;  %s44_s7 = int_to_ptr.vmem [resolvable:$true] %s43_s7 }
   0xb   :  { %49 = dma.hbm_to_vmem [thread:$0]  %s42_s29, 5120, %s44_s7, [#allocation6], %s480_s23, %s480_s23, %s481_s24  }
   0xc   :  { %s56_s8 = sshll.u32 %s484_s0, 4  ;;  %s485_s9 = smov 16   ;;  %s57_s8 = int_to_ptr.vmem [resolvable:$true] %s56_s8 }
   0xd   :  { %s486_s10 = smov 1  }
   0xe   :  { %62 = dma.hbm_to_vmem [thread:$0]  %s55_s5, 96, %s57_s8, [#allocation9], %s485_s9, %s485_s9, %s486_s10  }
   0xf   :  { %471 = dma.done.wait [#allocation3], 128  }
  0x10   :  { %472 = vsyncadd [#allocation3], 4294967168 }
  0x11   :  { %473 = dma.done.wait [#allocation6], 6016  }
  0x12   :  { %474 = vsyncadd [#allocation6], 4294961280 }
  0x13   :  { %475 = dma.done.wait [#allocation9], 96  }
  0x14   :  { %476 = vsyncadd [#allocation9], 4294967200  ;;  %vm95_vm0 = vcmask 1043456   ;;  %v86_v0 = vld [vmem:[#allocation5 + $0x30] sm:$0xf]  ;;  %v85_v1 = vld [vmem:[#allocation5 + $0x28] sm:$0xff] }
  0x15   :  { %329 = vmatpush.msk.msra.mxu0 %vm95_vm0, %v86_v0  ;;  %v84_v2 = vld [vmem:[#allocation5 + $0x20] sm:$0xff]  ;;  %v127_v3 = vld [vmem:[#allocation7 + $0x38] sm:$0xff]  ;;  %v83_v4 = vld [vmem:[#allocation5 + $0x18] sm:$0xff]  ;;  %vm91_vm1 = vcmask 424960   ;;  %vm133_vm2 = vcmask 523264   ;;  %s487_s2 = smov [#allocation10]  }
  0x16   :  { %145 = vmatpush.msra.mxu1 %v127_v3  ;;  %v126_v5 = vld [vmem:[#allocation7 + $0x30] sm:$0xff]  ;;  %v82_v6 = vld [vmem:[#allocation5 + $0x10] sm:$0xff]  ;;  %v125_v7 = vld [vmem:[#allocation7 + $0x28] sm:$0xff]  ;;  %s315_s3 = sshll.u32 %s487_s2, 4  ;;  %s317_s13 = sshll.u32 %s539_s4, 4  ;;  %s316_s3 = int_to_ptr.vmem [resolvable:$true] %s315_s3  ;;  %s318_s13 = int_to_ptr.hbm [resolvable:$true] %s317_s13 }
  0x17   :  { %109 = vmatpush.msra.mxu0 %v85_v1  ;;  %v124_v8 = vld [vmem:[#allocation7 + $0x20] sm:$0xff]  ;;  %v81_v9 = vld [vmem:[#allocation5 + $0x8] sm:$0xff]  ;;  %v123_v10 = vld [vmem:[#allocation7 + $0x18] sm:$0xff] }
  0x18   :  { %146 = vmatpush.msra.mxu1 %v126_v5  ;;  %v80_v11 = vld [vmem:[#allocation5] sm:$0xff]  ;;  %v79_v12 = vld [vmem:[#allocation2] sm:$0xff]  ;;  %v122_v13 = vld [vmem:[#allocation7 + $0x10] sm:$0xff] }
  0x19   :  { %110 = vmatpush.msra.mxu0 %v84_v2  ;;  %v121_v14 = vld [vmem:[#allocation7 + $0x8] sm:$0xff]  ;;  %v120_v15 = vld [vmem:[#allocation7] sm:$0xff]  ;;  %v166_v16 = vld [vmem:[#allocation7 + $0x78] sm:$0xff] }
  0x1a   :  { %147 = vmatpush.msra.mxu1 %v125_v7  ;;  %v165_v17 = vld [vmem:[#allocation7 + $0x70] sm:$0xff]  ;;  %183 = vmatpush.msra.mxu2 %v166_v16  ;;  %v164_v18 = vld [vmem:[#allocation7 + $0x68] sm:$0xff]  ;;  %v163_v19 = vld [vmem:[#allocation7 + $0x60] sm:$0xff] }
  0x1b   :  { %111 = vmatpush.msra.mxu0 %v83_v4  ;;  %v162_v20 = vld [vmem:[#allocation7 + $0x58] sm:$0xff]  ;;  %v345_v21 = vld [vmem:[#allocation8] ss:$0 sm:$0xff]  ;;  %v161_v25 = vld [vmem:[#allocation7 + $0x50] sm:$0xff] }
  0x1c   :  { %148 = vmatpush.msra.mxu1 %v124_v8  ;;  %184 = vmatpush.msra.mxu2 %v165_v17  ;;  %v160_v26 = vld [vmem:[#allocation7 + $0x48] sm:$0xff]  ;;  %v159_v27 = vld [vmem:[#allocation7 + $0x40] sm:$0xff]  ;;  %v203_v28 = vld [vmem:[#allocation7 + $0xb8] sm:$0xff] }
  0x1d   :  { %112 = vmatpush.msra.mxu0 %v82_v6  ;;  %v202_v29 = vld [vmem:[#allocation7 + $0xb0] sm:$0xff]  ;;  %220 = vmatpush.msra.mxu3 %v203_v28  ;;  %v201_v30 = vld [vmem:[#allocation7 + $0xa8] sm:$0xff]  ;;  %v200_v31 = vld [vmem:[#allocation7 + $0xa0] sm:$0xff] }
  0x1e   :  { %149 = vmatpush.msra.mxu1 %v123_v10  ;;  %185 = vmatpush.msra.mxu2 %v164_v18  ;;  %v199_v32 = vld [vmem:[#allocation7 + $0x98] sm:$0xff]  ;;  %v198_v33 = vld [vmem:[#allocation7 + $0x90] sm:$0xff]  ;;  %v346_v34 = vld [vmem:[#allocation8 + $0x1] ss:$0 sm:$0xff] }
  0x1f   :  { %113 = vmatpush.msra.mxu0 %v81_v9  ;;  %221 = vmatpush.msra.mxu3 %v202_v29  ;;  %v197_v38 = vld [vmem:[#allocation7 + $0x88] sm:$0xff]  ;;  %v196_v39 = vld [vmem:[#allocation7 + $0x80] sm:$0xff]  ;;  %v241_v40 = vld [vmem:[#allocation7 + $0xf8] sm:$0xff] }
  0x20   :  { %150 = vmatpush.msra.mxu1 %v122_v13  ;;  %186 = vmatpush.msra.mxu2 %v163_v19  ;;  %v240_v41 = vld [vmem:[#allocation7 + $0xf0] sm:$0xff]  ;;  %v239_v42 = vld [vmem:[#allocation7 + $0xe8] sm:$0xff]  ;;  %v238_v43 = vld [vmem:[#allocation7 + $0xe0] sm:$0xff] }
  0x21   :  { %114 = vmatpush.msra.mxu0 %v80_v11  ;;  %222 = vmatpush.msra.mxu3 %v201_v30  ;;  %v237_v44 = vld [vmem:[#allocation7 + $0xd8] sm:$0xff]  ;;  %v347_v45 = vld [vmem:[#allocation8 + $0x2] ss:$0 sm:$0xff]  ;;  %v236_v48 = vld [vmem:[#allocation7 + $0xd0] sm:$0xff] }
  0x22   :  { %330 = vmatmul.msk.f32.vlgmr.msra.gmra.mxu0 %vm91_vm1, %v79_v12  ;;  %151 = vmatpush.msra.mxu1 %v121_v14  ;;  %v235_v49 = vld [vmem:[#allocation7 + $0xc8] sm:$0xff]  ;;  %v234_v50 = vld [vmem:[#allocation7 + $0xc0] sm:$0xff]  ;;  %v279_v51 = vld [vmem:[#allocation7 + $0x138] sm:$0xff] }
  0x23   :  { %187 = vmatpush.msra.mxu2 %v162_v20  ;;  %223 = vmatpush.msra.mxu3 %v200_v31  ;;  %v278_v52 = vld [vmem:[#allocation7 + $0x130] sm:$0xff]  ;;  %v277_v53 = vld [vmem:[#allocation7 + $0x128] sm:$0xff]  ;;  %v276_v54 = vld [vmem:[#allocation7 + $0x120] sm:$0xff] }
  0x24   :  { %152 = vmatpush.msra.mxu1 %v120_v15  ;;  %258 = vmatpush.msrb.mxu0 %v241_v40  ;;  %v275_v55 = vld [vmem:[#allocation7 + $0x118] sm:$0xff]  ;;  %v348_v56 = vld [vmem:[#allocation8 + $0x3] ss:$0 sm:$0xff]  ;;  %v274_v60 = vld [vmem:[#allocation7 + $0x110] sm:$0xff] }
  0x25   :  { %188 = vmatpush.msra.mxu2 %v161_v25  ;;  %224 = vmatpush.msra.mxu3 %v199_v32  ;;  %v273_v61 = vld [vmem:[#allocation7 + $0x108] sm:$0xff]  ;;  %v272_v62 = vld [vmem:[#allocation7 + $0x100] sm:$0xff] }
  0x26   :  { %259 = vmatpush.msrb.mxu0 %v240_v41  ;;  %296 = vmatpush.msrb.mxu1 %v279_v51  ;;  %v349_v63 = vld [vmem:[#allocation8 + $0x4] ss:$0 sm:$0xff]  ;;  %v350_v3 = vld [vmem:[#allocation8 + $0x5] ss:$0 sm:$0xff] }
  0x27   :  { %189 = vmatpush.msra.mxu2 %v160_v26  ;;  %225 = vmatpush.msra.mxu3 %v198_v33 }
  0x28   :  { %260 = vmatpush.msrb.mxu0 %v239_v42  ;;  %297 = vmatpush.msrb.mxu1 %v278_v52 }
  0x29   :  { %190 = vmatpush.msra.mxu2 %v159_v27  ;;  %226 = vmatpush.msra.mxu3 %v197_v38 }
  0x2a   :  { %261 = vmatpush.msrb.mxu0 %v238_v43  ;;  %298 = vmatpush.msrb.mxu1 %v277_v53 }
  0x2b   :  { %227 = vmatpush.msra.mxu3 %v196_v39 }
  0x2c   :  { %262 = vmatpush.msrb.mxu0 %v237_v44  ;;  %299 = vmatpush.msrb.mxu1 %v276_v54 }
  0x2e   :  { %263 = vmatpush.msrb.mxu0 %v236_v48  ;;  %300 = vmatpush.msrb.mxu1 %v275_v55 }
  0x30   :  { %264 = vmatpush.msrb.mxu0 %v235_v49  ;;  %301 = vmatpush.msrb.mxu1 %v274_v60 }
  0x32   :  { %265 = vmatpush.msrb.mxu0 %v234_v50  ;;  %302 = vmatpush.msrb.mxu1 %v273_v61 }
  0x34   :  { %303 = vmatpush.msrb.mxu1 %v272_v62 }
  0x9f   :  { %v116_v22 = vpop.f32.mrf.mxu0 }
  0xa0   :  { %v117_v23 = vadd.f32 %v345_v21, %v116_v22 }
  0xa2   :  { %v119_v24 = vmax.f32 %v117_v23, 0.0 }
  0xa4   :  { %331 = vmatmul.msk.f32.vlgmr.msra.gmra.mxu1 %vm133_vm2, %v119_v24 }
 0x121   :  { %v154_v35 = vpop.f32.mrf.mxu1 }
 0x122   :  { %v155_v36 = vadd.f32 %v346_v34, %v154_v35 }
 0x124   :  { %v157_v37 = vmax.f32 %v155_v36, 0.0 }
 0x126   :  { %332 = vmatmul.msk.f32.vlgmr.msra.gmra.mxu2 %vm133_vm2, %v157_v37 }
 0x1a9   :  { %v192_v46 = vpop.f32.mrf.mxu2 }
 0x1aa   :  { %v193_v47 = vadd.f32 %v347_v45, %v192_v46 }
 0x1ac   :  { %333 = vmatmul.msk.f32.vlgmr.msra.gmra.mxu3 %vm133_vm2, %v193_v47 }
 0x22f   :  { %v229_v57 = vpop.f32.mrf.mxu3 }
 0x230   :  { %v230_v58 = vadd.f32 %v348_v56, %v229_v57 }
 0x232   :  { %v232_v59 = vmax.f32 %v230_v58, 0.0 }
 0x234   :  { %334 = vmatmul.msk.f32.vlgmr.msrb.gmra.mxu0 %vm133_vm2, %v232_v59 }
 0x2b1   :  { %v267_v0 = vpop.f32.mrf.mxu0 }
 0x2b2   :  { %v268_v1 = vadd.f32 %v349_v63, %v267_v0 }
 0x2b4   :  { %v270_v2 = vmax.f32 %v268_v1, 0.0 }
 0x2b6   :  { %335 = vmatmul.msk.f32.vlgmr.msrb.gmra.mxu1 %vm133_vm2, %v270_v2 }
 0x333   :  { %v305_v4 = vpop.f32.mrf.mxu1 }
 0x334   :  { %v306_v5 = vadd.f32 %v350_v3, %v305_v4 }
 0x336   :  { %v308_v6 = vmax.f32 %v306_v5, 0.0 }
 0x338   :  { %309 = vst.msk [vmem:[#allocation10] sm:$0xff] %vm91_vm1, %v308_v6 }
 0x339   :  { %320 = dma.vmem_to_hbm [thread:$0]  %s316_s3, 128, %s318_s13, [#allocation4]  }
 0x33a   :  { %477 = dma.done.wait [#allocation4], 128  }
 0x33b   :  { %478 = vsyncadd [#allocation4], 4294967168 }
 0x33c   :  { %325 = vsyncpa [#allocation3], 1 }
 0x33d   :  { %326 = vsyncpa [#allocation6], 1 }
 0x33e   :  { %327 = vsyncpa [#allocation9], 1 }
 0x33f   :  { %328 = vsyncpa [#allocation4], 1 }

</bundles_post_ra>
